<compile_context>
chip_gen: v6e
topology: v6e:2x2x1
jax: 0.10.0
libtpu: 0.0.40
codegen_flags: <defaults>
</compile_context>

<pallas_src>
import jax
import jax.numpy as jnp
from jax.experimental import pallas as pl
from jax.experimental.pallas import tpu as pltpu

_MASK_VALUE = -1e30  # finite: -inf would turn fully-padded rows into NaN (0/0)


def _round_up(n, m):
    return ((n + m - 1) // m) * m


def _pad2(a, rows, cols):
    return jnp.pad(a, ((0, rows - a.shape[0]), (0, cols - a.shape[1])))


def _mxu_lane_align():
    """256 on 256-wide-MXU chips (v6e/v7x), 128 on older TPUs / non-TPU backends."""
    try:
        kind = jax.devices()[0].device_kind.lower()
    except Exception:
        return 128
    if "tpu" not in kind:
        return 128
    for old in ("v2", "v3", "v4", "v5"):
        if old in kind:
            return 128
    return 256


def mlp_kernel(x_ref, w1_ref, b1_ref, w2_ref, b2_ref, w3_ref, b3_ref, o_ref):
    cd = w1_ref.dtype  # MXU operand dtype (bf16 perf path, or f32)

    # layer1: Linear + ReLU  (f32 accumulation on the MXU, elementwise in f32)
    h1 = jnp.dot(x_ref[...], w1_ref[...], preferred_element_type=jnp.float32)
    h1 = jnp.maximum(h1 + b1_ref[...], 0.0)

    # layer2: Linear + ReLU
    h2 = jnp.dot(h1.astype(cd), w2_ref[...], preferred_element_type=jnp.float32)
    h2 = jnp.maximum(h2 + b2_ref[...], 0.0)

    # layer3: Linear + softmax.  Padded class lanes are already masked via the
    # -1e30 values baked into b3's padded lanes (host-side), so no iota/where.
    logits = jnp.dot(h2.astype(cd), w3_ref[...], preferred_element_type=jnp.float32)
    logits = logits + b3_ref[...]

    m = jnp.max(logits, axis=-1, keepdims=True)
    e = jnp.exp(logits - m)
    denom = jnp.sum(e, axis=-1, keepdims=True)
    # Exact normalization (approx reciprocal broke rows-sum-to-1 within 2e-3).
    o_ref[...] = (e * (1.0 / denom)).astype(o_ref.dtype)


def prepare_params(params, *, compute_dtype=jnp.bfloat16, lane_align=None):
    """Pad + cast parameters ONCE (hoisted out of the per-call forward path)."""
    w1, b1, w2, b2, w3, b3 = params
    n_features, n_hidden = w1.shape
    n_classes = w3.shape[1]
    if lane_align is None:
        lane_align = _mxu_lane_align()

    f_pad = _round_up(n_features, lane_align)
    h_pad = _round_up(n_hidden, lane_align)
    c_pad = _round_up(n_classes, lane_align)

    # Weights feed the MXU -> compute_dtype.  Biases stay f32 (VPU path).
    w1p = _pad2(w1, f_pad, h_pad).astype(compute_dtype)
    w2p = _pad2(w2, h_pad, h_pad).astype(compute_dtype)
    w3p = _pad2(w3, h_pad, c_pad).astype(compute_dtype)
    b1p = _pad2(b1, 1, h_pad)
    b2p = _pad2(b2, 1, h_pad)
    # Fold the softmax class-mask into b3's padded lanes (no-op if c_pad == n_classes).
    b3p = jnp.pad(b3, ((0, 0), (0, c_pad - n_classes)), constant_values=_MASK_VALUE)

    padded = (w1p, b1p, w2p, b2p, w3p, b3p)
    meta = dict(n_features=n_features, n_hidden=n_hidden, n_classes=n_classes,
                f_pad=f_pad, h_pad=h_pad, c_pad=c_pad, compute_dtype=compute_dtype)
    return padded, meta


def mlp_forward(x, padded_params, meta, *, block_batch=256):
    """x: [batch, n_features] f32.  padded_params/meta from prepare_params()."""
    w1p, b1p, w2p, b2p, w3p, b3p = padded_params
    batch = x.shape[0]
    f_pad, h_pad, c_pad = meta["f_pad"], meta["h_pad"], meta["c_pad"]
    n_classes = meta["n_classes"]
    cd = meta["compute_dtype"]
    cbytes = jnp.dtype(cd).itemsize

    # Batch tile: large when the batch is large, otherwise the (8-aligned) batch.
    tb = min(block_batch, _round_up(batch, 8))
    b_pad = _round_up(batch, tb)

    xp = _pad2(x, b_pad, f_pad).astype(cd)

    # VMEM budget: single-buffered resident weights/biases + double-buffered
    # x/out tiles + headroom for Mosaic internal scratch.  Capped at 48 MiB so
    # v7x's 64 MiB per-TC VMEM keeps headroom; only exceeded if genuinely needed.
    weight_bytes = ((f_pad * h_pad + h_pad * h_pad + h_pad * c_pad) * cbytes
                    + (2 * h_pad + c_pad) * 4)
    tile_bytes = 2 * (tb * f_pad * cbytes + tb * c_pad * 4)
    needed = weight_bytes + tile_bytes + (8 << 20)
    vmem_limit = max(needed, 32 << 20)
    vmem_limit = min(vmem_limit, 48 << 20)
    vmem_limit = max(vmem_limit, needed)

    # TODO(synk): tile layer2 over a K/N grid axis (f32 VMEM accumulator) once
    # h_pad*h_pad weights exceed the VMEM budget (large n_hidden on v7x).

    def resident(shape):
        # Constant index_map -> stays in VMEM across batch tiles; single buffer.
        return pl.BlockSpec(shape, lambda i: (0, 0), pipeline_mode=pl.Buffered(1))

    out_padded = pl.pallas_call(
        mlp_kernel,
        out_shape=jax.ShapeDtypeStruct((b_pad, c_pad), jnp.float32),
        grid_spec=pltpu.PrefetchScalarGridSpec(
            num_scalar_prefetch=0,
            grid=(b_pad // tb,),
            in_specs=[
                pl.BlockSpec((tb, f_pad), lambda i: (i, 0)),   # x tile (double-buffered)
                resident((f_pad, h_pad)),                      # W1
                resident((1, h_pad)),                          # b1
                resident((h_pad, h_pad)),                      # W2
                resident((1, h_pad)),                          # b2
                resident((h_pad, c_pad)),                      # W3
                resident((1, c_pad)),                          # b3 (class mask folded in)
            ],
            out_specs=pl.BlockSpec((tb, c_pad), lambda i: (i, 0)),
        ),
        compiler_params=pltpu.CompilerParams(
            dimension_semantics=("parallel",),
            vmem_limit_bytes=int(vmem_limit),
        ),
    )(xp, w1p, b1p, w2p, b2p, w3p, b3p)

    # Strip batch/class padding.
    return out_padded[:batch, :n_classes]


def init_params(key, n_features, n_hidden, n_classes):
    """Deterministic init mimicking nn.Linear default (uniform +/- 1/sqrt(fan_in))."""
    def linear(k, fan_in, fan_out):
        kw, kb = jax.random.split(k)
        bound = 1.0 / jnp.sqrt(fan_in)
        # stored as [in, out] so the kernel computes x @ W
        w = jax.random.uniform(kw, (fan_in, fan_out), jnp.float32, -bound, bound)
        b = jax.random.uniform(kb, (1, fan_out), jnp.float32, -bound, bound)
        return w, b

    k1, k2, k3 = jax.random.split(key, 3)
    w1, b1 = linear(k1, n_features, n_hidden)
    w2, b2 = linear(k2, n_hidden, n_hidden)
    w3, b3 = linear(k3, n_hidden, n_classes)
    return (w1, b1, w2, b2, w3, b3)


def mlp_reference(x, params):
    w1, b1, w2, b2, w3, b3 = params
    h1 = jax.nn.relu(x @ w1 + b1)
    h2 = jax.nn.relu(h1 @ w2 + b2)
    return jax.nn.softmax(h2 @ w3 + b3, axis=1)


if __name__ == "__main__":
    batch, n_features, n_hidden, n_classes = 8, 16, 32, 8

    key = jax.random.PRNGKey(0)
    kx, kp = jax.random.split(key)
    x = jax.random.normal(kx, (batch, n_features), dtype=jnp.float32)
    params = init_params(kp, n_features, n_hidden, n_classes)
    ref = mlp_reference(x, params)

    # Default perf config: bf16 MXU operands, f32 accumulation/elementwise.
    padded_bf16, meta_bf16 = prepare_params(params, compute_dtype=jnp.bfloat16)
    out = mlp_forward(x, padded_bf16, meta_bf16)
    jax.block_until_ready(out)
    assert out.shape == (batch, n_classes)
    assert bool(jnp.all(jnp.abs(jnp.sum(out, axis=1) - 1.0) < 1e-3))      # exact softmax norm
    assert bool(jnp.all(jnp.abs(out - ref) < 2e-2))                        # bf16 operand tolerance

    # Full-f32 path for a tight numerical check against the reference.
    padded_f32, meta_f32 = prepare_params(params, compute_dtype=jnp.float32)
    out_f32 = mlp_forward(x, padded_f32, meta_f32)
    jax.block_until_ready(out_f32)
    assert bool(jnp.all(jnp.abs(jnp.sum(out_f32, axis=1) - 1.0) < 1e-3))
    assert bool(jnp.all(jnp.abs(out_f32 - ref) < 2e-3))

    print("KERNEL_OK")
</pallas_src>

<mosaic_0001>
module attributes {stable_mosaic.version = 11 : i64} {
  func.func @mlp_kernel(%arg0: i32, %arg1: memref<8x128xbf16, #tpu.memory_space<vmem>>, %arg2: memref<128x128xbf16, #tpu.memory_space<vmem>>, %arg3: memref<1x128xf32, #tpu.memory_space<vmem>>, %arg4: memref<128x128xbf16, #tpu.memory_space<vmem>>, %arg5: memref<1x128xf32, #tpu.memory_space<vmem>>, %arg6: memref<128x128xbf16, #tpu.memory_space<vmem>>, %arg7: memref<1x128xf32, #tpu.memory_space<vmem>>, %arg8: memref<8x128xf32, #tpu.memory_space<vmem>>) attributes {dimension_semantics = [#tpu.dimension_semantics<parallel>], iteration_bounds = array<i64: 1>, scalar_prefetch = 0 : i64, scratch_operands = 0 : i64, tpu.core_type = #tpu.core_type<tc>, window_params = [{transform_indices = @transform_0, window_bounds = array<i64: 8, 128>}, {pipeline_mode = #tpu.pipeline_mode<synchronous>, transform_indices = @transform_1, window_bounds = array<i64: 128, 128>}, {pipeline_mode = #tpu.pipeline_mode<synchronous>, transform_indices = @transform_2, window_bounds = array<i64: 1, 128>}, {pipeline_mode = #tpu.pipeline_mode<synchronous>, transform_indices = @transform_3, window_bounds = array<i64: 128, 128>}, {pipeline_mode = #tpu.pipeline_mode<synchronous>, transform_indices = @transform_4, window_bounds = array<i64: 1, 128>}, {pipeline_mode = #tpu.pipeline_mode<synchronous>, transform_indices = @transform_5, window_bounds = array<i64: 128, 128>}, {pipeline_mode = #tpu.pipeline_mode<synchronous>, transform_indices = @transform_6, window_bounds = array<i64: 1, 128>}, {transform_indices = @transform_7, window_bounds = array<i64: 8, 128>}]} {
    %c0 = arith.constant 0 : index
    %c0_0 = arith.constant 0 : index
    %0 = vector.load %arg1[%c0, %c0_0] : memref<8x128xbf16, #tpu.memory_space<vmem>>, vector<8x128xbf16>
    %c0_1 = arith.constant 0 : index
    %c0_2 = arith.constant 0 : index
    %1 = vector.load %arg2[%c0_1, %c0_2] : memref<128x128xbf16, #tpu.memory_space<vmem>>, vector<128x128xbf16>
    %cst = arith.constant dense<0.000000e+00> : vector<8x128xf32>
    %2 = tpu.matmul %0, %1, %cst {dimension_numbers = #tpu.dot_dimension_numbers<[1], [0], [0], [1], [0, 0, 1, 1], [], []>} : vector<8x128xbf16>, vector<128x128xbf16>, vector<8x128xf32> -> vector<8x128xf32>
    %c0_3 = arith.constant 0 : index
    %c0_4 = arith.constant 0 : index
    %3 = vector.load %arg3[%c0_3, %c0_4] : memref<1x128xf32, #tpu.memory_space<vmem>>, vector<1x128xf32>
    %4 = vector.broadcast %3 : vector<1x128xf32> to vector<8x128xf32>
    %5 = arith.addf %2, %4 : vector<8x128xf32>
    %cst_5 = arith.constant 0.000000e+00 : f32
    %6 = vector.broadcast %cst_5 : f32 to vector<8x128xf32>
    %7 = arith.maximumf %5, %6 : vector<8x128xf32>
    %8 = arith.truncf %7 : vector<8x128xf32> to vector<8x128xbf16>
    %c0_6 = arith.constant 0 : index
    %c0_7 = arith.constant 0 : index
    %9 = vector.load %arg4[%c0_6, %c0_7] : memref<128x128xbf16, #tpu.memory_space<vmem>>, vector<128x128xbf16>
    %cst_8 = arith.constant dense<0.000000e+00> : vector<8x128xf32>
    %10 = tpu.matmul %8, %9, %cst_8 {dimension_numbers = #tpu.dot_dimension_numbers<[1], [0], [0], [1], [0, 0, 1, 1], [], []>} : vector<8x128xbf16>, vector<128x128xbf16>, vector<8x128xf32> -> vector<8x128xf32>
    %c0_9 = arith.constant 0 : index
    %c0_10 = arith.constant 0 : index
    %11 = vector.load %arg5[%c0_9, %c0_10] : memref<1x128xf32, #tpu.memory_space<vmem>>, vector<1x128xf32>
    %12 = vector.broadcast %11 : vector<1x128xf32> to vector<8x128xf32>
    %13 = arith.addf %10, %12 : vector<8x128xf32>
    %cst_11 = arith.constant 0.000000e+00 : f32
    %14 = vector.broadcast %cst_11 : f32 to vector<8x128xf32>
    %15 = arith.maximumf %13, %14 : vector<8x128xf32>
    %16 = arith.truncf %15 : vector<8x128xf32> to vector<8x128xbf16>
    %c0_12 = arith.constant 0 : index
    %c0_13 = arith.constant 0 : index
    %17 = vector.load %arg6[%c0_12, %c0_13] : memref<128x128xbf16, #tpu.memory_space<vmem>>, vector<128x128xbf16>
    %cst_14 = arith.constant dense<0.000000e+00> : vector<8x128xf32>
    %18 = tpu.matmul %16, %17, %cst_14 {dimension_numbers = #tpu.dot_dimension_numbers<[1], [0], [0], [1], [0, 0, 1, 1], [], []>} : vector<8x128xbf16>, vector<128x128xbf16>, vector<8x128xf32> -> vector<8x128xf32>
    %c0_15 = arith.constant 0 : index
    %c0_16 = arith.constant 0 : index
    %19 = vector.load %arg7[%c0_15, %c0_16] : memref<1x128xf32, #tpu.memory_space<vmem>>, vector<1x128xf32>
    %20 = vector.broadcast %19 : vector<1x128xf32> to vector<8x128xf32>
    %21 = arith.addf %18, %20 : vector<8x128xf32>
    %cst_17 = arith.constant dense<0xFF800000> : vector<8xf32>
    %22 = vector.multi_reduction <maximumf>, %21, %cst_17 [1] : vector<8x128xf32> to vector<8xf32>
    %23 = vector.shape_cast %22 : vector<8xf32> to vector<8x1xf32>
    %24 = vector.broadcast %23 : vector<8x1xf32> to vector<8x128xf32>
    %25 = arith.subf %21, %24 : vector<8x128xf32>
    %26 = math.exp %25 : vector<8x128xf32>
    %cst_18 = arith.constant dense<0.000000e+00> : vector<8xf32>
    %27 = vector.multi_reduction <add>, %26, %cst_18 [1] : vector<8x128xf32> to vector<8xf32>
    %28 = vector.shape_cast %27 : vector<8xf32> to vector<8x1xf32>
    %cst_19 = arith.constant 1.000000e+00 : f32
    %29 = vector.broadcast %cst_19 : f32 to vector<8x1xf32>
    %30 = arith.divf %29, %28 : vector<8x1xf32>
    %31 = vector.broadcast %30 : vector<8x1xf32> to vector<8x128xf32>
    %32 = arith.mulf %26, %31 : vector<8x128xf32>
    %c0_20 = arith.constant 0 : index
    %c0_21 = arith.constant 0 : index
    %33 = vector.load %arg8[%c0_20, %c0_21] : memref<8x128xf32, #tpu.memory_space<vmem>>, vector<8x128xf32>
    tpu.vector_store %arg8[%c0_20, %c0_21], %32 {strides = array<i32>} : memref<8x128xf32, #tpu.memory_space<vmem>>, vector<8x128xf32>,
    return
  }
  func.func @transform_0(%arg0: i32) -> (i32, i32) {
    %c0_i32 = arith.constant 0 : i32
    %c0_i32_0 = arith.constant 0 : i32
    return %arg0, %c0_i32 : i32, i32
  }
  func.func @transform_1(%arg0: i32) -> (i32, i32) {
    %c0_i32 = arith.constant 0 : i32
    %c0_i32_0 = arith.constant 0 : i32
    %c0_i32_1 = arith.constant 0 : i32
    return %c0_i32, %c0_i32_0 : i32, i32
  }
  func.func @transform_2(%arg0: i32) -> (i32, i32) {
    %c0_i32 = arith.constant 0 : i32
    %c0_i32_0 = arith.constant 0 : i32
    %c0_i32_1 = arith.constant 0 : i32
    return %c0_i32, %c0_i32_0 : i32, i32
  }
  func.func @transform_3(%arg0: i32) -> (i32, i32) {
    %c0_i32 = arith.constant 0 : i32
    %c0_i32_0 = arith.constant 0 : i32
    %c0_i32_1 = arith.constant 0 : i32
    return %c0_i32, %c0_i32_0 : i32, i32
  }
  func.func @transform_4(%arg0: i32) -> (i32, i32) {
    %c0_i32 = arith.constant 0 : i32
    %c0_i32_0 = arith.constant 0 : i32
    %c0_i32_1 = arith.constant 0 : i32
    return %c0_i32, %c0_i32_0 : i32, i32
  }
  func.func @transform_5(%arg0: i32) -> (i32, i32) {
    %c0_i32 = arith.constant 0 : i32
    %c0_i32_0 = arith.constant 0 : i32
    %c0_i32_1 = arith.constant 0 : i32
    return %c0_i32, %c0_i32_0 : i32, i32
  }
  func.func @transform_6(%arg0: i32) -> (i32, i32) {
    %c0_i32 = arith.constant 0 : i32
    %c0_i32_0 = arith.constant 0 : i32
    %c0_i32_1 = arith.constant 0 : i32
    return %c0_i32, %c0_i32_0 : i32, i32
  }
  func.func @transform_7(%arg0: i32) -> (i32, i32) {
    %c0_i32 = arith.constant 0 : i32
    %c0_i32_0 = arith.constant 0 : i32
    return %arg0, %c0_i32 : i32, i32
  }
}

</mosaic_0001>

<bundles_post_ra>
// kernel: tpu_custom_call.1
= control target key start
LH: loop header
LB: loop body
LE: loop exit
PB: predicated region body
PF: predicated region fallthrough
CT: control target
= control target key end

     0   :  { %12 = vsyncpa [#allocation3], 0  ;;  %s818_s0 = inlined_call_operand.hbm [shape: bf16[8,128], index: 0, kind: input, shape index: {}]   ;;  %s819_s1 = inlined_call_operand.hbm [shape: bf16[128,128], index: 1, kind: input, shape index: {}]   ;;  %s820_s2 = inlined_call_operand.vmem [shape: f32[1,128], index: 2, kind: input, shape index: {}]   ;;  %s821_s3 = inlined_call_operand.hbm [shape: bf16[128,128], index: 3, kind: input, shape index: {}]   ;;  %s822_s4 = inlined_call_operand.vmem [shape: f32[1,128], index: 4, kind: input, shape index: {}]   ;;  %s823_s5 = inlined_call_operand.hbm [shape: bf16[128,128], index: 5, kind: input, shape index: {}]   ;;  %s824_s6 = inlined_call_operand.vmem [shape: f32[1,128], index: 6, kind: input, shape index: {}]   ;;  %s825_s7 = inlined_call_operand.hbm [shape: f32[8,128], index: 7, kind: output, shape index: {}]  }
   0x1   :  { %13 = vsyncpa [#allocation6], 0 }
   0x2   :  { %14 = vsyncpa [#allocation9], 0 }
   0x3   :  { %15 = vsyncpa [#allocation4], 0  ;;  %s706_s24 = smov [#allocation5]  }
   0x4   :  { %s31_s25 = sshll.u32 %s706_s24, 4  ;;  %s32_s25 = int_to_ptr.vmem [resolvable:$true] %s31_s25 }
   0x5   :  { %s606_s26 = scalar_lea.vmem %s32_s25, 1024  ;;  %p611_p1 = scmp.lt.s32.totalorder %s32_s25, %s32_s25 }
   0x6   :  { %p607_p0 = scmp.ne.s32.totalorder %s32_s25, %s606_s26  ;;  %p612_p2 = scmp.lt.s32.totalorder %s606_s26, %s606_s26 }
   0x8   :  { %p613_p3 = por %p612_p2, %p611_p1 }
   0xa   :  { %p614_p4 = pnand %p613_p3, %p607_p0 }
   0xc   :  { %617 = shalt.err (!%p614_p4)
}
   0xd   :  { %s707_s27 = smov 64   ;;  %s708_s28 = smov 4  }
   0xe   :  { %37 = dma.hbm_to_vmem [thread:$0]  %s819_s1, 1024, %s32_s25, [#allocation6], %s707_s27, %s707_s27, %s708_s28  }
   0xf   :  { %s709_s8 = smov [#allocation2]   ;;  %s710_s10 = smov [#allocation7]  }
  0x10   :  { %s22_s9 = sshll.u32 %s709_s8, 4  ;;  %s45_s11 = sshll.u32 %s710_s10, 4  ;;  %s23_s9 = int_to_ptr.vmem [resolvable:$true] %s22_s9  ;;  %s46_s11 = int_to_ptr.vmem [resolvable:$true] %s45_s11 }
  0x11   :  { %s626_s12 = scalar_lea.vmem %s23_s9, 64  ;;  %p631_p6 = scmp.lt.s32.totalorder %s23_s9, %s23_s9 }
  0x12   :  { %p627_p5 = scmp.ne.s32.totalorder %s23_s9, %s626_s12  ;;  %p632_p7 = scmp.lt.s32.totalorder %s626_s12, %s626_s12 }
  0x14   :  { %p633_p8 = por %p632_p7, %p631_p6 }
  0x16   :  { %p634_p9 = pnand %p633_p8, %p627_p5 }
  0x18   :  { %637 = shalt.err (!%p634_p9)
}
  0x19   :  { %25 = dma.hbm_to_vmem [thread:$0]  %s818_s0, 64, %s23_s9, [#allocation3]  }
  0x1a   :  { %s646_s15 = scalar_lea.vmem %s46_s11, 1024  ;;  %p651_p11 = scmp.lt.s32.totalorder %s46_s11, %s46_s11 }
  0x1b   :  { %p647_p10 = scmp.ne.s32.totalorder %s46_s11, %s646_s15  ;;  %p652_p12 = scmp.lt.s32.totalorder %s646_s15, %s646_s15 }
  0x1d   :  { %p653_p13 = por %p652_p12, %p651_p11 }
  0x1f   :  { %p654_p0 = pnand %p653_p13, %p647_p10 }
  0x21   :  { %657 = shalt.err (!%p654_p0)
}
  0x22   :  { %51 = dma.hbm_to_vmem [thread:$0]  %s821_s3, 1024, %s46_s11, [#allocation6], %s707_s27, %s707_s27, %s708_s28  }
  0x23   :  { %s711_s17 = smov [#allocation8]  }
  0x24   :  { %s59_s18 = sshll.u32 %s711_s17, 4  ;;  %s60_s18 = int_to_ptr.vmem [resolvable:$true] %s59_s18 }
  0x25   :  { %s666_s19 = scalar_lea.vmem %s60_s18, 1024  ;;  %p671_p2 = scmp.lt.s32.totalorder %s60_s18, %s60_s18 }
  0x26   :  { %p667_p1 = scmp.ne.s32.totalorder %s60_s18, %s666_s19  ;;  %p672_p3 = scmp.lt.s32.totalorder %s666_s19, %s666_s19 }
  0x28   :  { %p673_p4 = por %p672_p3, %p671_p2 }
  0x2a   :  { %p674_p5 = pnand %p673_p4, %p667_p1 }
  0x2c   :  { %677 = shalt.err (!%p674_p5)
}
  0x2d   :  { %65 = dma.hbm_to_vmem [thread:$0]  %s823_s5, 1024, %s60_s18, [#allocation9], %s707_s27, %s707_s27, %s708_s28  }
  0x2e   :  { %698 = dma.done.wait [#allocation3], 64  }
  0x2f   :  { %699 = vsyncadd [#allocation3], 4294967232 }
  0x30   :  { %700 = dma.done.wait [#allocation6], 2048  }
  0x31   :  { %701 = vsyncadd [#allocation6], 4294965248 }
  0x32   :  { %702 = dma.done.wait [#allocation9], 1024  }
  0x33   :  { %703 = vsyncadd [#allocation9], 4294966272  ;;  %v712_v0 = vmov 0.0   ;;  %vm713_vm0 = vmmov 0   ;;  %v570_v1 = vld [vmem:[#allocation5 + $0x38] sm:$0xff]   ;;  %v571_v2 = vld [vmem:[#allocation5 + $0x30] sm:$0xff]  }
  0x34   :  { %501 = vmatprep.subr.bf16.mxu0 %v712_v0  ;;  %517 = vmatprep.mubr.msk.bf16.mxu0 %vm713_vm0, %v712_v0  ;;  %v572_v3 = vld [vmem:[#allocation5 + $0x28] sm:$0xff]   ;;  %v578_v4 = vld [vmem:[#allocation7 + $0x38] sm:$0xff]   ;;  %v573_v5 = vld [vmem:[#allocation5 + $0x20] sm:$0xff]  }
  0x35   :  { %521 = vmatprep.subr.bf16.mxu1 %v712_v0  ;;  %537 = vmatprep.mubr.msk.bf16.mxu1 %vm713_vm0, %v712_v0  ;;  %v579_v6 = vld [vmem:[#allocation7 + $0x30] sm:$0xff]   ;;  %v574_v7 = vld [vmem:[#allocation5 + $0x18] sm:$0xff]   ;;  %v580_v8 = vld [vmem:[#allocation7 + $0x28] sm:$0xff]  }
  0x36   :  { %502 = vmatpush3.bf16.msra.mxu0 %v570_v1  ;;  %522 = vmatpush3.bf16.msra.mxu1 %v578_v4  ;;  %v575_v9 = vld [vmem:[#allocation5 + $0x10] sm:$0xff]   ;;  %v581_v10 = vld [vmem:[#allocation7 + $0x20] sm:$0xff]   ;;  %v576_v11 = vld [vmem:[#allocation5 + $0x8] sm:$0xff]  }
  0x37   :  { %503 = vmatprep.subr.bf16.mxu0 %v712_v0  ;;  %523 = vmatprep.subr.bf16.mxu1 %v712_v0  ;;  %v582_v12 = vld [vmem:[#allocation7 + $0x18] sm:$0xff]   ;;  %v577_v13 = vld [vmem:[#allocation5] sm:$0xff]   ;;  %v583_v14 = vld [vmem:[#allocation7 + $0x10] sm:$0xff]  }
  0x38   :  { %v81_v15 = vld [vmem:[#allocation2] sm:$0xf]  ;;  %v584_v16 = vld [vmem:[#allocation7 + $0x8] sm:$0xff]   ;;  %v585_v17 = vld [vmem:[#allocation7] sm:$0xff]  }
  0x39   :  { %v586_v18 = vld [vmem:[#allocation8 + $0x38] sm:$0xff]   ;;  %v587_v19 = vld [vmem:[#allocation8 + $0x30] sm:$0xff]   ;;  %v588_v20 = vld [vmem:[#allocation8 + $0x28] sm:$0xff]  }
  0x3a   :  { %504 = vmatpush3.bf16.msra.mxu0 %v571_v2  ;;  %524 = vmatpush3.bf16.msra.mxu1 %v579_v6  ;;  %v589_v21 = vld [vmem:[#allocation8 + $0x20] sm:$0xff]   ;;  %v590_v22 = vld [vmem:[#allocation8 + $0x18] sm:$0xff]   ;;  %v591_v23 = vld [vmem:[#allocation8 + $0x10] sm:$0xff]  }
  0x3b   :  { %505 = vmatprep.subr.bf16.mxu0 %v712_v0  ;;  %525 = vmatprep.subr.bf16.mxu1 %v712_v0  ;;  %v447_v24 = vld [vmem:[%s820_s2] ss:$0 sm:$0xff]  ;;  %v592_v32 = vld [vmem:[#allocation8 + $0x8] sm:$0xff]   ;;  %v593_v33 = vld [vmem:[#allocation8] sm:$0xff]  }
  0x3c   :  { %v456_v34 = vld [vmem:[%s822_s4] ss:$0 sm:$0xff]  ;;  %s714_s4 = smov [#allocation10]  }
  0x3d   :  { %v465_v42 = vld [vmem:[%s824_s6] ss:$0 sm:$0xff]  ;;  %s436_s24 = sshll.u32 %s714_s4, 4  ;;  %s437_s24 = int_to_ptr.vmem [resolvable:$true] %s436_s24 }
  0x3e   :  { %506 = vmatpush3.bf16.msra.mxu0 %v572_v3  ;;  %526 = vmatpush3.bf16.msra.mxu1 %v580_v8  ;;  %s678_s6 = scalar_lea.vmem %s437_s24, 128  ;;  %p683_p7 = scmp.lt.s32.totalorder %s437_s24, %s437_s24 }
  0x3f   :  { %507 = vmatprep.subr.bf16.mxu0 %v712_v0  ;;  %527 = vmatprep.subr.bf16.mxu1 %v712_v0  ;;  %p679_p6 = scmp.ne.s32.totalorder %s437_s24, %s678_s6  ;;  %p684_p8 = scmp.lt.s32.totalorder %s678_s6, %s678_s6 }
  0x41   :  { %p685_p9 = por %p684_p8, %p683_p7 }
  0x42   :  { %508 = vmatpush3.bf16.msra.mxu0 %v573_v5  ;;  %528 = vmatpush3.bf16.msra.mxu1 %v581_v10 }
  0x43   :  { %509 = vmatprep.subr.bf16.mxu0 %v712_v0  ;;  %529 = vmatprep.subr.bf16.mxu1 %v712_v0  ;;  %p686_p10 = pnand %p685_p9, %p679_p6 }
  0x46   :  { %510 = vmatpush3.bf16.msra.mxu0 %v574_v7  ;;  %530 = vmatpush3.bf16.msra.mxu1 %v582_v12 }
  0x47   :  { %511 = vmatprep.subr.bf16.mxu0 %v712_v0  ;;  %531 = vmatprep.subr.bf16.mxu1 %v712_v0 }
  0x4a   :  { %512 = vmatpush3.bf16.msra.mxu0 %v575_v9  ;;  %532 = vmatpush3.bf16.msra.mxu1 %v583_v14 }
  0x4b   :  { %513 = vmatprep.subr.bf16.mxu0 %v712_v0  ;;  %533 = vmatprep.subr.bf16.mxu1 %v712_v0 }
  0x4e   :  { %514 = vmatpush3.bf16.msra.mxu0 %v576_v11  ;;  %534 = vmatpush3.bf16.msra.mxu1 %v584_v16 }
  0x4f   :  { %515 = vmatprep.subr.bf16.mxu0 %v712_v0  ;;  %535 = vmatprep.subr.bf16.mxu1 %v712_v0 }
  0x52   :  { %516 = vmatpush3.bf16.msra.mxu0 %v577_v13  ;;  %536 = vmatpush3.bf16.msra.mxu1 %v585_v17 }
  0x53   :  { %541 = vmatprep.subr.bf16.mxu0 %v712_v0 }
  0x55   :  { %518 = vmatmul.mubr.bf16.vlgmr.msra.gmra.mxu0 %v81_v15 }
  0x56   :  { %557 = vmatprep.mubr.msk.bf16.mxu0 %vm713_vm0, %v712_v0  ;;  %542 = vmatpush3.bf16.msra.mxu0 %v586_v18 }
  0x57   :  { %543 = vmatprep.subr.bf16.mxu0 %v712_v0 }
  0x5a   :  { %544 = vmatpush3.bf16.msra.mxu0 %v587_v19 }
  0x5b   :  { %545 = vmatprep.subr.bf16.mxu0 %v712_v0 }
  0x5e   :  { %546 = vmatpush3.bf16.msra.mxu0 %v588_v20 }
  0x5f   :  { %547 = vmatprep.subr.bf16.mxu0 %v712_v0 }
  0x62   :  { %548 = vmatpush3.bf16.msra.mxu0 %v589_v21 }
  0x63   :  { %549 = vmatprep.subr.bf16.mxu0 %v712_v0 }
  0x66   :  { %550 = vmatpush3.bf16.msra.mxu0 %v590_v22 }
  0x67   :  { %551 = vmatprep.subr.bf16.mxu0 %v712_v0 }
  0x6a   :  { %552 = vmatpush3.bf16.msra.mxu0 %v591_v23 }
  0x6b   :  { %553 = vmatprep.subr.bf16.mxu0 %v712_v0 }
  0x6e   :  { %554 = vmatpush3.bf16.msra.mxu0 %v592_v32 }
  0x6f   :  { %555 = vmatprep.subr.bf16.mxu0 %v712_v0 }
  0x72   :  { %556 = vmatpush3.bf16.msra.mxu0 %v593_v33 }
 0x115   :  { %v187_v25 = vpop.f32.mrf.mxu0 }
 0x116   :  { %v188_v26 = vadd.f32 %v447_v24, %v187_v25 }
 0x117   :  { %v519_v27 = vpop.f32.mrf.mxu0 }
 0x118   :  { %v193_v28 = vmax.f32 %v188_v26, 0.0 }
 0x119   :  { %v190_v29 = vpop.f32.mrf.mxu0 }
 0x11a   :  { %v194_v30 = vpack.c.bf16 %v193_v28, %v193_v28 }
 0x11b   :  { %v520_v31 = vpop.f32.mrf.mxu0 }
 0x11c   :  { %538 = vmatmul.mubr.bf16.vlgmr.msra.gmra.mxu1 %v194_v30 }
 0x1dc   :  { %v300_v35 = vpop.f32.mrf.mxu1 }
 0x1dd   :  { %v301_v36 = vadd.f32 %v456_v34, %v300_v35 }
 0x1de   :  { %v539_v37 = vpop.f32.mrf.mxu1 }
 0x1df   :  { %v306_v38 = vmax.f32 %v301_v36, 0.0 }
 0x1e0   :  { %v303_v39 = vpop.f32.mrf.mxu1 }
 0x1e1   :  { %v307_v40 = vpack.c.bf16 %v306_v38, %v306_v38 }
 0x1e2   :  { %v540_v41 = vpop.f32.mrf.mxu1 }
 0x1e3   :  { %558 = vmatmul.mubr.bf16.vlgmr.msra.gmra.mxu0 %v307_v40 }
 0x2a3   :  { %v413_v43 = vpop.f32.mrf.mxu0 }
 0x2a4   :  { %v414_v44 = vadd.f32 %v465_v42, %v413_v43 }
 0x2a5   :  { %v559_v45 = vpop.f32.mrf.mxu0 }
 0x2a6   :  { %419 = vmax.xlane.f32.xlu0 %v414_v44 }
 0x2a7   :  { %v416_v46 = vpop.f32.mrf.mxu0 }
 0x2a9   :  { %v560_v47 = vpop.f32.mrf.mxu0 }
 0x32f   :  { %v420_v48 = vpop.xlane.xlu0 %419 }
 0x330   :  { %v421_v49 = vsub.f32 %v414_v44, %v420_v48 }
 0x332   :  { %v422_v50 = vmul.f32 1.442695, %v421_v49 }
 0x334   :  { %594 = vpow2.f32 %v422_v50 }
 0x341   :  { %v595_v51 = vpop.eup %594 }
 0x342   :  { %424 = vadd.xlane.f32.xlu0 %v595_v51 }
 0x3cb   :  { %v425_v52 = vpop.xlane.xlu0 %424 }
 0x3cc   :  { %596 = vrcp.f32 %v425_v52 }
 0x3d9   :  { %v597_v53 = vpop.eup %596 }
 0x3da   :  { %v428_v54 = vmul.f32 %v597_v53, %v595_v51 }
 0x3dc   :  { %429 = vst [vmem:[#allocation10] sm:$0xff] %v428_v54 }
 0x3dd   :  { %689 = shalt.err (!%p686_p10)
}
 0x3de   :  { %439 = dma.vmem_to_hbm [thread:$0]  %s437_s24, 128, %s825_s7, [#allocation4]  }
 0x3df   :  { %704 = dma.done.wait [#allocation4], 128  }
 0x3e0   :  { %705 = vsyncadd [#allocation4], 4294967168 }
 0x3e1   :  { %443 = vsyncpa [#allocation3], 1 }
 0x3e2   :  { %444 = vsyncpa [#allocation6], 1 }
 0x3e3   :  { %445 = vsyncpa [#allocation9], 1 }
 0x3e4   :  { %446 = vsyncpa [#allocation4], 1 }

</bundles_post_ra>
